<compile_context>
chip_gen: v7x
topology: tpu7x:2x2x1
jax: 0.10.0
libtpu: 0.0.40
codegen_flags: <defaults>
</compile_context>

<pallas_src>
import jax
import jax.numpy as jnp
import numpy as np
from jax.experimental import pallas as pl
from jax.experimental.pallas import tpu as pltpu


def attw_kernel(x_ref, z_ref, w_ref, v_ref, out_ref):
    # x: (Bn, L, d), z: (Bn, d), w: (d, d) = W.weight, v: (1, d), out: (Bn, 1)

    # zw = z @ W.weight  -> (Bn, d).  Single dense MXU matmul, f32 accumulate.
    zw = jnp.dot(z_ref[...], w_ref[...], preferred_element_type=jnp.float32)

    x = x_ref[...].astype(jnp.float32)  # keep VPU/EUP math in f32

    # scores[b, l] = sum_d x[b, l, d] * zw[b, d]   (VPU mul + lane reduce over d)
    scores = jnp.sum(x * zw[:, None, :], axis=-1)            # (Bn, L)

    # Numerically-stable softmax over L (L is fully inside this block).
    m = jnp.max(scores, axis=-1, keepdims=True)
    e = jnp.exp(scores - m)
    p = e * pl.reciprocal(jnp.sum(e, axis=-1, keepdims=True), approx=True)

    # ctx[b, d] = sum_l p[b, l] * x[b, l, d]       (VPU mul + reduce over L)
    ctx = jnp.sum(p[:, :, None] * x, axis=1)                 # (Bn, d)

    # out[b] = sum_d ctx[b, d] * v[d]              (v lane-major; lane reduce)
    v = v_ref[...].astype(jnp.float32)                       # (1, d)
    out_ref[...] = jnp.sum(ctx * v, axis=-1, keepdims=True).astype(out_ref.dtype)


def attw_forward(x, z, w_weight, v, *, block_n=None):
    n, L, d = x.shape
    assert z.shape == (n, d)
    assert w_weight.shape == (d, d)
    v2 = jnp.asarray(v).reshape(1, d)  # lane-major: d sits on the 128-wide lane axis

    # Batch tile: largest multiple of 8 that divides n (sublane-aligned blocks),
    # else take the whole batch in one block.  Keep tiles modest so double-
    # buffered X blocks stay well inside the v7x 64 MiB VMEM budget.
    if block_n is None:
        block_n = n
        for cand in (256, 128, 64, 32, 16, 8):
            if n % cand == 0:
                block_n = cand
                break
    assert n % block_n == 0, (n, block_n)
    grid = (n // block_n,)

    itemsize = jnp.dtype(x.dtype).itemsize
    flops = n * (2 * d * d + 4 * L * d + 2 * d + 5 * L)
    bytes_accessed = itemsize * (n * L * d + n * d + d * d + d) + 4 * n
    transcendentals = n * (L + 1)  # exp per score + one reciprocal per row

    return pl.pallas_call(
        attw_kernel,
        out_shape=jax.ShapeDtypeStruct((n, 1), jnp.float32),
        grid=grid,
        in_specs=[
            pl.BlockSpec((block_n, L, d), lambda i: (i, 0, 0)),  # X batch tile
            pl.BlockSpec((block_n, d), lambda i: (i, 0)),        # z batch tile
            pl.BlockSpec((d, d), lambda i: (0, 0)),              # W.weight (resident)
            pl.BlockSpec((1, d), lambda i: (0, 0)),              # v (resident, lane-major)
        ],
        out_specs=pl.BlockSpec((block_n, 1), lambda i: (i, 0)),
        compiler_params=pltpu.CompilerParams(
            dimension_semantics=("parallel",),
        ),
        cost_estimate=pl.CostEstimate(
            flops=flops,
            transcendentals=transcendentals,
            bytes_accessed=bytes_accessed,
        ),
    )(x, z, w_weight, v2)


def attw_reference(x, z, w_weight, v):
    wx = jnp.einsum("nld,ed->nle", x, w_weight)
    scores = jnp.einsum("ne,nle->nl", z, wx)
    p = jax.nn.softmax(scores, axis=-1)
    ctx = jnp.einsum("nl,nld->nd", p, x)
    return (ctx @ v)[:, None]


if __name__ == "__main__":
    n, L, d = 2, 8, 32
    std = 0.01

    key = jax.random.PRNGKey(0)
    k_x, k_z, k_w, k_v = jax.random.split(key, 4)

    # Parameters matching the module's __init__ shapes.
    w_weight = std * jax.random.normal(k_w, (d, d), dtype=jnp.float32)  # nn.Linear(d,d).weight
    v = std * jax.random.normal(k_v, (d,), dtype=jnp.float32)           # nn.Parameter

    # Example inputs.
    x = jax.random.normal(k_x, (n, L, d), dtype=jnp.float32)   # input_seq
    z = jax.random.normal(k_z, (n, d), dtype=jnp.float32)      # cross_input

    out = attw_forward(x, z, w_weight, v)
    jax.block_until_ready(out)

    ref = attw_reference(x, z, w_weight, v)
    assert out.shape == (n, 1), out.shape
    # Tolerance loosened slightly vs. the f32-exact version because the softmax
    # denominator uses the EUP approximate reciprocal (pl.reciprocal(approx=True)).
    np.testing.assert_allclose(np.asarray(out), np.asarray(ref), rtol=2e-3, atol=1e-5)

    print("KERNEL_OK")
</pallas_src>

<mosaic_0001>
module attributes {stable_mosaic.version = 11 : i64} {
  func.func @attw_kernel(%arg0: i32, %arg1: memref<2x8x32xf32, #tpu.memory_space<vmem>>, %arg2: memref<2x32xf32, #tpu.memory_space<vmem>>, %arg3: memref<32x32xf32, #tpu.memory_space<vmem>>, %arg4: memref<1x32xf32, #tpu.memory_space<vmem>>, %arg5: memref<2x1xf32, #tpu.memory_space<vmem>>) attributes {dimension_semantics = [#tpu.dimension_semantics<parallel>], iteration_bounds = array<i64: 1>, scalar_prefetch = 0 : i64, scratch_operands = 0 : i64, tpu.core_type = #tpu.core_type<tc>, window_params = [{transform_indices = @transform_0, window_bounds = array<i64: 2, 8, 32>}, {transform_indices = @transform_1, window_bounds = array<i64: 2, 32>}, {pipeline_mode = #tpu.pipeline_mode<synchronous>, transform_indices = @transform_2, window_bounds = array<i64: 32, 32>}, {pipeline_mode = #tpu.pipeline_mode<synchronous>, transform_indices = @transform_3, window_bounds = array<i64: 1, 32>}, {transform_indices = @transform_4, window_bounds = array<i64: 2, 1>}]} {
    %c0 = arith.constant 0 : index
    %c0_0 = arith.constant 0 : index
    %0 = vector.load %arg2[%c0, %c0_0] : memref<2x32xf32, #tpu.memory_space<vmem>>, vector<2x32xf32>
    %c0_1 = arith.constant 0 : index
    %c0_2 = arith.constant 0 : index
    %1 = vector.load %arg3[%c0_1, %c0_2] : memref<32x32xf32, #tpu.memory_space<vmem>>, vector<32x32xf32>
    %cst = arith.constant dense<0.000000e+00> : vector<2x32xf32>
    %2 = tpu.matmul %0, %1, %cst {dimension_numbers = #tpu.dot_dimension_numbers<[1], [0], [0], [1], [0, 0, 1, 1], [], []>} : vector<2x32xf32>, vector<32x32xf32>, vector<2x32xf32> -> vector<2x32xf32>
    %c0_3 = arith.constant 0 : index
    %c0_4 = arith.constant 0 : index
    %c0_5 = arith.constant 0 : index
    %3 = vector.load %arg1[%c0_3, %c0_4, %c0_5] : memref<2x8x32xf32, #tpu.memory_space<vmem>>, vector<2x8x32xf32>
    %4 = vector.shape_cast %2 : vector<2x32xf32> to vector<2x1x32xf32>
    %5 = vector.broadcast %4 : vector<2x1x32xf32> to vector<2x8x32xf32>
    %6 = arith.mulf %3, %5 : vector<2x8x32xf32>
    %cst_6 = arith.constant dense<0.000000e+00> : vector<2x8xf32>
    %7 = vector.multi_reduction <add>, %6, %cst_6 [2] : vector<2x8x32xf32> to vector<2x8xf32>
    %cst_7 = arith.constant dense<0xFF800000> : vector<2xf32>
    %8 = vector.multi_reduction <maximumf>, %7, %cst_7 [1] : vector<2x8xf32> to vector<2xf32>
    %9 = vector.shape_cast %8 : vector<2xf32> to vector<2x1xf32>
    %10 = vector.broadcast %9 : vector<2x1xf32> to vector<2x8xf32>
    %11 = arith.subf %7, %10 : vector<2x8xf32>
    %12 = math.exp %11 : vector<2x8xf32>
    %cst_8 = arith.constant dense<0.000000e+00> : vector<2xf32>
    %13 = vector.multi_reduction <add>, %12, %cst_8 [1] : vector<2x8xf32> to vector<2xf32>
    %14 = vector.shape_cast %13 : vector<2xf32> to vector<2x1xf32>
    %15 = tpu.reciprocal %14 {approx = true} : vector<2x1xf32> -> vector<2x1xf32>
    %16 = vector.broadcast %15 : vector<2x1xf32> to vector<2x8xf32>
    %17 = arith.mulf %12, %16 : vector<2x8xf32>
    %18 = vector.shape_cast %17 : vector<2x8xf32> to vector<2x8x1xf32>
    %19 = vector.broadcast %18 : vector<2x8x1xf32> to vector<2x8x32xf32>
    %20 = arith.mulf %19, %3 : vector<2x8x32xf32>
    %cst_9 = arith.constant dense<0.000000e+00> : vector<2x32xf32>
    %21 = vector.multi_reduction <add>, %20, %cst_9 [1] : vector<2x8x32xf32> to vector<2x32xf32>
    %c0_10 = arith.constant 0 : index
    %c0_11 = arith.constant 0 : index
    %22 = vector.load %arg4[%c0_10, %c0_11] : memref<1x32xf32, #tpu.memory_space<vmem>>, vector<1x32xf32>
    %23 = vector.broadcast %22 : vector<1x32xf32> to vector<2x32xf32>
    %24 = arith.mulf %21, %23 : vector<2x32xf32>
    %cst_12 = arith.constant dense<0.000000e+00> : vector<2xf32>
    %25 = vector.multi_reduction <add>, %24, %cst_12 [1] : vector<2x32xf32> to vector<2xf32>
    %26 = vector.shape_cast %25 : vector<2xf32> to vector<2x1xf32>
    %c0_13 = arith.constant 0 : index
    %c0_14 = arith.constant 0 : index
    %27 = vector.load %arg5[%c0_13, %c0_14] : memref<2x1xf32, #tpu.memory_space<vmem>>, vector<2x1xf32>
    tpu.vector_store %arg5[%c0_13, %c0_14], %26 {strides = array<i32>} : memref<2x1xf32, #tpu.memory_space<vmem>>, vector<2x1xf32>,
    return
  }
  func.func @transform_0(%arg0: i32) -> (i32, i32, i32) {
    %c0_i32 = arith.constant 0 : i32
    %c0_i32_0 = arith.constant 0 : i32
    %c0_i32_1 = arith.constant 0 : i32
    return %arg0, %c0_i32, %c0_i32_0 : i32, i32, i32
  }
  func.func @transform_1(%arg0: i32) -> (i32, i32) {
    %c0_i32 = arith.constant 0 : i32
    %c0_i32_0 = arith.constant 0 : i32
    return %arg0, %c0_i32 : i32, i32
  }
  func.func @transform_2(%arg0: i32) -> (i32, i32) {
    %c0_i32 = arith.constant 0 : i32
    %c0_i32_0 = arith.constant 0 : i32
    %c0_i32_1 = arith.constant 0 : i32
    return %c0_i32, %c0_i32_0 : i32, i32
  }
  func.func @transform_3(%arg0: i32) -> (i32, i32) {
    %c0_i32 = arith.constant 0 : i32
    %c0_i32_0 = arith.constant 0 : i32
    %c0_i32_1 = arith.constant 0 : i32
    return %c0_i32, %c0_i32_0 : i32, i32
  }
  func.func @transform_4(%arg0: i32) -> (i32, i32) {
    %c0_i32 = arith.constant 0 : i32
    %c0_i32_0 = arith.constant 0 : i32
    return %arg0, %c0_i32 : i32, i32
  }
}

</mosaic_0001>

<bundles_post_ra>
// kernel: tpu_custom_call.1
= control target key start
LH: loop header
LB: loop body
LE: loop exit
PB: predicated region body
PF: predicated region fallthrough
CT: control target
= control target key end

     0   :  { %9 = vsyncpa [#allocation3], 0  ;;  %s456_s0 = inlined_call_operand.hbm [shape: f32[2,8,32], index: 0, kind: input, shape index: {}]   ;;  %s457_s1 = inlined_call_operand.vmem [shape: f32[2,32], index: 1, kind: input, shape index: {}]   ;;  %s458_s2 = inlined_call_operand.hbm [shape: f32[32,32], index: 2, kind: input, shape index: {}]   ;;  %s459_s3 = inlined_call_operand.vmem [shape: f32[1,32], index: 3, kind: input, shape index: {}]   ;;  %s460_s4 = inlined_call_operand.vmem [shape: f32[2,1], index: 4, kind: output, shape index: {}]  }
   0x1   :  { %10 = vsyncpa [#allocation5], 0  ;;  %s379_s15 = smov [#allocation2]   ;;  %s331_s19 = scalar_lea.hbm %s456_s0, 256 }
   0x2   :  { %s16_s16 = sshll.u32 %s379_s15, 4  ;;  %p332_p0 = scmp.ne.s32.totalorder %s456_s0, %s331_s19  ;;  %s17_s16 = int_to_ptr.vmem [resolvable:$true] %s16_s16 }
   0x3   :  { %p335_p1 = scmp.lt.u32.totalorder %s331_s19, %s456_s0 }
   0x5   :  { %p337_p2 = pnand %p335_p1, %p332_p0 }
   0x7   :  { %340 = shalt.err (!%p337_p2)
}
   0x8   :  { %s341_s24 = scalar_lea.vmem %s17_s16, 256  ;;  %p346_p4 = scmp.lt.s32.totalorder %s17_s16, %s17_s16 }
   0x9   :  { %p342_p3 = scmp.ne.s32.totalorder %s17_s16, %s341_s24  ;;  %p347_p5 = scmp.lt.s32.totalorder %s341_s24, %s341_s24 }
   0xb   :  { %p348_p6 = por %p347_p5, %p346_p4 }
   0xd   :  { %p349_p7 = pnand %p348_p6, %p342_p3 }
   0xf   :  { %352 = shalt.err (!%p349_p7)
}
  0x10   :  { %s380_s25 = smov 128   ;;  %s381_s26 = smov 8  }
  0x11   :  { %22 = dma.hbm_to_vmem [thread:$0]  %s456_s0, 256, %s17_s16, [#allocation3], %s380_s25, %s380_s25, %s381_s26  }
  0x12   :  { %s382_s29 = smov [#allocation4]   ;;  %s353_s7 = scalar_lea.hbm %s458_s2, 512 }
  0x13   :  { %s30_s30 = sshll.u32 %s382_s29, 4  ;;  %p354_p8 = scmp.ne.s32.totalorder %s458_s2, %s353_s7  ;;  %s31_s30 = int_to_ptr.vmem [resolvable:$true] %s30_s30 }
  0x14   :  { %p357_p9 = scmp.lt.u32.totalorder %s353_s7, %s458_s2 }
  0x16   :  { %p359_p10 = pnand %p357_p9, %p354_p8 }
  0x18   :  { %362 = shalt.err (!%p359_p10)
}
  0x19   :  { %s363_s12 = scalar_lea.vmem %s31_s30, 512  ;;  %p368_p12 = scmp.lt.s32.totalorder %s31_s30, %s31_s30 }
  0x1a   :  { %p364_p11 = scmp.ne.s32.totalorder %s31_s30, %s363_s12  ;;  %p369_p13 = scmp.lt.s32.totalorder %s363_s12, %s363_s12 }
  0x1c   :  { %p370_p0 = por %p369_p13, %p368_p12 }
  0x1e   :  { %p371_p1 = pnand %p370_p0, %p364_p11 }
  0x20   :  { %374 = shalt.err (!%p371_p1)
}
  0x21   :  { %36 = dma.hbm_to_vmem [thread:$0]  %s458_s2, 512, %s31_s30, [#allocation5], %s380_s25, %s380_s25, %s381_s26  }
  0x22   :  { %375 = dma.done.wait [#allocation3], 256  }
  0x23   :  { %376 = vsyncadd [#allocation3], 4294967040 }
  0x24   :  { %377 = dma.done.wait [#allocation5], 512  }
  0x25   :  { %378 = vsyncadd [#allocation5], 4294966784  ;;  %v383_v0 = vmov 0.0|0.0   ;;  %vm384_vm0 = vmmov 0   ;;  %v385_v1 = vmov 0.0   ;;  %v46_v2 = vld [vmem:[#allocation4] sm:$0xff]  ;;  %v130_v11 = vlaneseq }
  0x26   :  { %308 = vmatprep.subr.bf16.mxu0 %v383_v0  ;;  %305 = vmatprep.mubr.msk.f32.mxu0 %vm384_vm0, %v385_v1  ;;  %v47_v3 = vld [vmem:[#allocation4 + $0x8] sm:$0xff]  ;;  %v48_v4 = vld [vmem:[#allocation4 + $0x10] sm:$0xff]  ;;  %v49_v6 = vld [vmem:[#allocation4 + $0x18] sm:$0xff]  ;;  %vm50_vm1 = vcmask 261120   ;;  %v386_v9 = vmov 1966171168  }
  0x27   :  { %v309_v5 = vpack.c.bf16 %v47_v3, %v46_v2  ;;  %v312_v7 = vpack.c.bf16 %v49_v6, %v48_v4  ;;  %v45_v8 = vld [vmem:[%s457_s1] sm:$0x3]  ;;  %v128_v10 = vunpack.c.l.s4 %v386_v9  ;;  %v131_v13 = vshrl.u32 %v130_v11, 7  ;;  %v125_v24 = vld [vmem:[#allocation2 + $0x8] sm:$0xff] }
  0x28   :  { %v124_v21 = vld [vmem:[#allocation2] sm:$0xff]  ;;  %v170_v30 = vand.u32 127, %v130_v11  ;;  %vm179_vm2 = vcmask 1041409   ;;  %vm182_vm3 = vcmask 58368   ;;  %v387_v38 = vmov 0  }
  0x29   :  { %310 = vmatpush3.bf16.msra.mxu0 %v309_v5  ;;  %v129_v12 = vunpack.c.0.s8 %v128_v10  ;;  %v151_v18 = vsub.s32 0, %v131_v13  ;;  %324 = vset.pattern.permute.xlu0 %v387_v38  ;;  %v193_v39 = vsub.s32 1, %v131_v13  ;;  %v291_v11 = vld [vmem:[%s459_s3] ss:$0 sm:$0xff]  ;;  %vm278_vm4 = vcmask 254976  }
  0x2a   :  { %311 = vmatprep.subr.bf16.mxu0 %v383_v0  ;;  %v173_v32 = vsub.s32 %v170_v30, %v131_v13  ;;  %323 = vset.pattern.permute.xlu1 %v387_v38  ;;  %vm282_vm5 = vcmask 1024  }
  0x2b   :  { %v132_v14 = vsub.s32 %v129_v12, %v131_v13 }
  0x2d   :  { %313 = vmatpush3.bf16.msra.mxu0 %v312_v7 }
  0x30   :  { %306 = vmatmul.mubr.msk.f32.vlgmr.msra.gmra.mrb[0].mxu0 %vm50_vm1, %v45_v8 }
 0x103   :  { %v120_v15 = vpop.f32.mrb[0].mxu0 }
 0x104   :  { %v133_v16 = vrot.slane %v120_v15, %v132_v14  ;;  %v307_v17 = vpop.f32.mrb[1].mxu0 }
 0x106   :  { %v134_v19 = vcombine.high %v133_v16, %v133_v16  ;;  %v141_v20 = vrot.slane %v133_v16, %v132_v14 }
 0x108   :  { %v148_v22 = vrot.slane %v134_v19, %v132_v14  ;;  %v152_v23 = vrot.slane %v141_v20, %v151_v18 }
 0x10a   :  { %v159_v25 = vmul.f32 %v152_v23, %v124_v21  ;;  %v156_v26 = vrot.slane %v148_v22, %v151_v18 }
 0x10c   :  { %v161_v27 = vsel %vm50_vm1, %v159_v25, 0.0  ;;  %v160_v28 = vmul.f32 %v156_v26, %v125_v24 }
 0x10d   :  { %162 = vadd.xlane.f32.xlu0 %v161_v27 }
 0x10e   :  { %v164_v29 = vsel %vm50_vm1, %v160_v28, 0.0 }
 0x111   :  { %165 = vadd.xlane.f32.xlu0 %v164_v29 }
 0x19a   :  { %v163_v31 = vpop.xlane.xlu0 %162 }
 0x19b   :  { %v174_v34 = vrot.slane %v163_v31, %v173_v32 }
 0x19e   :  { %v166_v33 = vpop.xlane.xlu0 %165 }
 0x19f   :  { %v178_v35 = vrot.slane %v166_v33, %v173_v32 }
 0x1a1   :  { %v180_v36 = vsel %vm179_vm2, %v178_v35, %v174_v34 }
 0x1a2   :  { %v183_v37 = vsel %vm182_vm3, %v180_v36, -inf }
 0x1a3   :  { %184 = vmax.xlane.f32.xlu1 %v183_v37 }
 0x230   :  { %v185_v40 = vpop.xlane.xlu1 %184 }
 0x231   :  { %v190_v41 = vrot.slane %v185_v40, %v151_v18  ;;  %v194_v42 = vrot.slane %v185_v40, %v193_v39 }
 0x233   :  { %v197_v43 = vsub.f32 %v163_v31, %v190_v41  ;;  %v198_v44 = vsub.f32 %v166_v33, %v194_v42 }
 0x235   :  { %v199_v45 = vmul.f32 1.442695, %v197_v43  ;;  %v201_v46 = vmul.f32 1.442695, %v198_v44 }
 0x237   :  { %325 = vpow2.f32 %v199_v45 }
 0x238   :  { %327 = vpow2.f32 %v201_v46 }
 0x241   :  { %v326_v47 = vpop.eup %325 }
 0x242   :  { %v328_v48 = vpop.eup %327  ;;  %206 = vperm.xlu1 %323, %v326_v47  }
 0x243   :  { %209 = vperm.xlu0 %324, %v328_v48  }
 0x2c1   :  { %v207_v49 = vpop.permute.xlu1 %206 }
 0x2c2   :  { %v210_v50 = vpop.permute.xlu0 %209  ;;  %v214_v51 = vrot.slane %v207_v49, %v173_v32 }
 0x2c3   :  { %v218_v52 = vrot.slane %v210_v50, %v173_v32 }
 0x2c5   :  { %v219_v53 = vsel %vm179_vm2, %v218_v52, %v214_v51 }
 0x2c6   :  { %v221_v54 = vsel %vm182_vm3, %v219_v53, 0.0 }
 0x2c7   :  { %222 = vadd.xlane.f32.xlu1 %v221_v54 }
 0x354   :  { %v223_v55 = vpop.xlane.xlu1 %222 }
 0x355   :  { %329 = vrcp.f32 %v223_v55 }
 0x35f   :  { %v330_v56 = vpop.eup %329 }
 0x360   :  { %v233_v57 = vrot.slane %v330_v56, %v193_v39  ;;  %v229_v59 = vrot.slane %v330_v56, %v151_v18 }
 0x362   :  { %v237_v58 = vmul.f32 %v328_v48, %v233_v57  ;;  %v236_v60 = vmul.f32 %v326_v47, %v229_v59 }
 0x364   :  { %245 = vperm.xlu0 %324, %v237_v58  }
 0x368   :  { %240 = vperm.xlu0 %324, %v236_v60  }
 0x3e3   :  { %v246_v61 = vpop.permute.xlu0 %245 }
 0x3e4   :  { %v249_v62 = vmul.f32 %v246_v61, %v125_v24 }
 0x3e6   :  { %v257_v63 = vsel %vm50_vm1, %v249_v62, 0.0 }
 0x3e7   :  { %v258_v0 = vrot.slane %v257_v63, 4  ;;  %v241_v1 = vpop.permute.xlu0 %240 }
 0x3e8   :  { %v248_v2 = vmul.f32 %v241_v1, %v124_v21 }
 0x3e9   :  { %v259_v3 = vadd.f32 %v258_v0, %v257_v63 }
 0x3ea   :  { %v250_v4 = vsel %vm50_vm1, %v248_v2, 0.0 }
 0x3eb   :  { %v260_v5 = vrot.slane %v259_v3, 2  ;;  %v251_v6 = vrot.slane %v250_v4, 4 }
 0x3ed   :  { %v261_v7 = vadd.f32 %v260_v5, %v259_v3  ;;  %v252_v8 = vadd.f32 %v251_v6, %v250_v4 }
 0x3ef   :  { %v262_v9 = vrot.slane %v261_v7, 1  ;;  %v253_v10 = vrot.slane %v252_v8, 2 }
 0x3f1   :  { %v263_v12 = vadd.f32 %v262_v9, %v261_v7  ;;  %v254_v13 = vadd.f32 %v253_v10, %v252_v8 }
 0x3f3   :  { %v255_v14 = vrot.slane %v254_v13, 1  ;;  %v272_v15 = vmul.f32 %v291_v11, %v263_v12 }
 0x3f5   :  { %v256_v16 = vadd.f32 %v255_v14, %v254_v13  ;;  %v275_v18 = vrot.slane %v272_v15, 7 }
 0x3f7   :  { %v271_v17 = vmul.f32 %v291_v11, %v256_v16 }
 0x3f9   :  { %v276_v19 = vsel %vm179_vm2, %v275_v18, %v271_v17 }
 0x3fa   :  { %v279_v20 = vsel %vm278_vm4, %v276_v19, 0.0 }
 0x3fb   :  { %280 = vadd.xlane.f32.xlu1 %v279_v20 }
 0x488   :  { %v281_v21 = vpop.xlane.xlu1 %280 }
 0x489   :  { %283 = vst.msk [vmem:[%s460_s4] sm:$0x3] %vm282_vm5, %v281_v21 }
 0x48a   :  { %288 = vsyncpa [#allocation3], 1 }
 0x48b   :  { %289 = vsyncpa [#allocation5], 1 }

</bundles_post_ra>
